<compile_context>
chip_gen: v5e
topology: v5e:2x2
jax: 0.10.0
libtpu: 0.0.40
codegen_flags: <defaults>
</compile_context>

<pallas_src>
import jax
import jax.numpy as jnp
from jax.experimental import pallas as pl
from jax.experimental.pallas import tpu as pltpu

FILTER_SIZES = (2, 3, 4)
FS_MAX = max(FILTER_SIZES)


def _round_up(x, m):
    return (x + m - 1) // m * m


def _pick_batch_tile(B):
    # Prefer sublane-aligned tiles; odd/small batches fall back to a single block.
    for bt in (128, 64, 32, 16, 8):
        if B % bt == 0:
            return bt
    return B


def cnn_kernel(emb_ref, wc_ref, bc_ref, mask_ref,
               w1_ref, b1_ref, w2_ref, b2_ref, w3_ref, b3_ref,
               out_ref):
    bt, s_pad, e = emb_ref.shape                      # [B_tile, S+pad, E] f32
    l_im = s_pad - FS_MAX + 1                         # pooled positions (multiple of 8)
    cf = wc_ref.shape[1]                              # 3 * n_filters

    emb = emb_ref[...]                                # f32

    # im2col: 4 shifted copies concatenated on the lane axis -> K = FS_MAX*E = 128.
    slab = jnp.concatenate([emb[:, r:r + l_im, :] for r in range(FS_MAX)], axis=-1)
    slab2d = slab.reshape(bt * l_im, FS_MAX * e).astype(wc_ref.dtype)   # bf16 [B*L, 128]

    # Single fused conv matmul for all three filter sizes (f32 accumulation).
    conv = jnp.dot(slab2d, wc_ref[...], preferred_element_type=jnp.float32)  # [B*L, 3F]
    conv = jnp.maximum(conv + bc_ref[...], 0.0)
    # Mask invalid tail windows (l >= S - fs + 1) to 0 after ReLU, before max-pool.
    conv = conv.reshape(bt, l_im, cf) * mask_ref[...][None, :, :]
    pooled = jnp.max(conv, axis=1)                    # [B_tile, 3F] f32

    # Fully connected stack (bf16 matmuls, f32 accumulation / bias / ReLU).
    h = jnp.dot(pooled.astype(w1_ref.dtype), w1_ref[...],
                preferred_element_type=jnp.float32) + b1_ref[...]
    h = jnp.maximum(h, 0.0)
    h = jnp.dot(h.astype(w2_ref.dtype), w2_ref[...],
                preferred_element_type=jnp.float32) + b2_ref[...]
    h = jnp.maximum(h, 0.0)
    out_ref[...] = jnp.dot(h.astype(w3_ref.dtype), w3_ref[...],
                           preferred_element_type=jnp.float32) + b3_ref[...]


def prepare_params(params, seq_len, dtype=jnp.bfloat16):
    """One-time wrapper-side prep: fuse/zero-pad conv weights, build pool mask,
    lane-pad the last FC layer, cast matmul weights to bf16."""
    E = params['wc0'].shape[0] // FILTER_SIZES[0]
    F = params['wc0'].shape[1]
    nf = len(FILTER_SIZES)
    K = FS_MAX * E
    CF = nf * F

    wc = jnp.zeros((K, CF), jnp.float32)
    bcs = []
    for j, fs in enumerate(FILTER_SIZES):
        wc = wc.at[:fs * E, j * F:(j + 1) * F].set(params[f'wc{j}'])
        bcs.append(params[f'bc{j}'])
    bc = jnp.concatenate(bcs, axis=-1)                 # [1, 3F] f32

    L_im = _round_up(seq_len - min(FILTER_SIZES) + 1, 8)
    valid = jnp.concatenate(
        [jnp.full((F,), seq_len - fs + 1, jnp.int32) for fs in FILTER_SIZES])
    mask = (jnp.arange(L_im)[:, None] < valid[None, :]).astype(jnp.float32)  # [L_im, 3F]

    out_size = params['w3'].shape[1]
    out_pad = max(_round_up(out_size, 128), 128)
    w3 = jnp.zeros((params['w3'].shape[0], out_pad),
                   jnp.float32).at[:, :out_size].set(params['w3'])
    b3 = jnp.zeros((1, out_pad), jnp.float32).at[:, :out_size].set(params['b3'])

    return {
        'wc': wc.astype(dtype), 'bc': bc, 'mask': mask,
        'w1': params['w1'].astype(dtype), 'b1': params['b1'],
        'w2': params['w2'].astype(dtype), 'b2': params['b2'],
        'w3': w3.astype(dtype), 'b3': b3,
        'out_size': out_size, 'seq_len': seq_len,
    }


def cnn_forward(embedded, p):
    """embedded: [B, S, E] float32 (post embedding lookup + emotion concat)."""
    B, S, E = embedded.shape
    L_im = p['mask'].shape[0]
    S_pad = L_im + FS_MAX - 1
    bt = _pick_batch_tile(B)
    out_pad = p['w3'].shape[1]

    emb = jnp.pad(embedded.astype(jnp.float32),
                  ((0, 0), (0, S_pad - S), (0, 0)))    # zero-pad seq axis

    res = pl.pallas_call(
        cnn_kernel,
        out_shape=jax.ShapeDtypeStruct((B, out_pad), jnp.float32),
        grid=(B // bt,),
        in_specs=[
            pl.BlockSpec((bt, S_pad, E), lambda b: (b, 0, 0)),
            pl.BlockSpec(p['wc'].shape, lambda b: (0, 0)),
            pl.BlockSpec(p['bc'].shape, lambda b: (0, 0)),
            pl.BlockSpec(p['mask'].shape, lambda b: (0, 0)),
            pl.BlockSpec(p['w1'].shape, lambda b: (0, 0)),
            pl.BlockSpec(p['b1'].shape, lambda b: (0, 0)),
            pl.BlockSpec(p['w2'].shape, lambda b: (0, 0)),
            pl.BlockSpec(p['b2'].shape, lambda b: (0, 0)),
            pl.BlockSpec(p['w3'].shape, lambda b: (0, 0)),
            pl.BlockSpec(p['b3'].shape, lambda b: (0, 0)),
        ],
        out_specs=pl.BlockSpec((bt, out_pad), lambda b: (b, 0)),
        compiler_params=pltpu.CompilerParams(dimension_semantics=("parallel",)),
    )(emb, p['wc'], p['bc'], p['mask'],
      p['w1'], p['b1'], p['w2'], p['b2'], p['w3'], p['b3'])
    return res[:, :p['out_size']]


def reference_forward(embedded, params):
    """Pure-JAX f32 reference mirroring the PyTorch forward (eval mode)."""
    B, S, E = embedded.shape
    pooled = []
    for name_w, name_b, fs in zip(('wc0', 'wc1', 'wc2'),
                                  ('bc0', 'bc1', 'bc2'), FILTER_SIZES):
        L = S - fs + 1
        w = params[name_w]                             # [fs*E, F]
        acc = jnp.zeros((B, L, w.shape[1]), jnp.float32)
        for r in range(fs):
            acc = acc + jnp.einsum('ble,ef->blf',
                                   embedded[:, r:r + L, :],
                                   w[r * E:(r + 1) * E, :])
        acc = jnp.maximum(acc + params[name_b], 0.0)
        pooled.append(jnp.max(acc, axis=1))
    cat = jnp.concatenate(pooled, axis=-1)
    h = jnp.maximum(cat @ params['w1'] + params['b1'], 0.0)
    h = jnp.maximum(h @ params['w2'] + params['b2'], 0.0)
    return h @ params['w3'] + params['b3']


if __name__ == "__main__":
    # Module hyper-parameters (small, consistent with __init__).
    vocab_size = 50
    pad_idx = 0
    embedding_dim = 24
    emotion_embedding_dim = 8
    use_emotion = True
    n_filters = 16
    output_size = 8
    batch, seq = 2, 16
    E = embedding_dim + emotion_embedding_dim          # total feature dim = 32
    fc_in = n_filters * len(FILTER_SIZES)              # 48

    key = jax.random.PRNGKey(0)
    keys = jax.random.split(key, 16)

    def init(k, shape, scale=0.1):
        return (scale * jax.random.normal(k, shape)).astype(jnp.float32)

    # Embedding tables (padding_idx row zeroed, as nn.Embedding does).
    emb_table = init(keys[0], (vocab_size, embedding_dim)).at[pad_idx].set(0.0)
    emo_table = init(keys[1], (vocab_size, emotion_embedding_dim)).at[pad_idx].set(0.0)

    params = {
        # Conv weights: PyTorch [F,1,fs,E] reshaped to [fs*E, F] (row-major over (fs,E)).
        'wc0': init(keys[2], (FILTER_SIZES[0] * E, n_filters)),
        'wc1': init(keys[3], (FILTER_SIZES[1] * E, n_filters)),
        'wc2': init(keys[4], (FILTER_SIZES[2] * E, n_filters)),
        'bc0': init(keys[5], (1, n_filters)),
        'bc1': init(keys[6], (1, n_filters)),
        'bc2': init(keys[7], (1, n_filters)),
        'w1': init(keys[8], (fc_in, 256)),
        'b1': init(keys[9], (1, 256)),
        'w2': init(keys[10], (256, 128)),
        'b2': init(keys[11], (1, 128)),
        'w3': init(keys[12], (128, output_size)),
        'b3': init(keys[13], (1, output_size)),
    }

    # Token ids (include some pad tokens).
    ids = jax.random.randint(keys[14], (batch, seq), 0, vocab_size)
    ids = ids.at[:, -2:].set(pad_idx)

    # Embedding lookup + emotion concat (glue, outside kernel).
    # TODO(synk): embedding gather stays in plain JAX; dropout layers are identity (inference).
    embedded = emb_table[ids]                          # [B, S, embedding_dim]
    if use_emotion:
        embedded = jnp.concatenate([embedded, emo_table[ids]], axis=-1)  # [B, S, E]
    embedded = embedded.astype(jnp.float32)

    prepped = prepare_params(params, seq)
    out = cnn_forward(embedded, prepped)
    out = jax.block_until_ready(out)

    ref = reference_forward(embedded, params)
    assert out.shape == (batch, output_size)
    # bf16 matmul weights/activations (f32 accumulation) vs. pure-f32 reference.
    assert jnp.allclose(out, ref, atol=2e-2, rtol=2e-2), \
        float(jnp.max(jnp.abs(out - ref)))

    print("KERNEL_OK")
</pallas_src>

<mosaic_0001>
module attributes {stable_mosaic.version = 11 : i64} {
  func.func @cnn_kernel(%arg0: i32, %arg1: memref<2x19x32xf32, #tpu.memory_space<vmem>>, %arg2: memref<128x48xbf16, #tpu.memory_space<vmem>>, %arg3: memref<1x48xf32, #tpu.memory_space<vmem>>, %arg4: memref<16x48xf32, #tpu.memory_space<vmem>>, %arg5: memref<48x256xbf16, #tpu.memory_space<vmem>>, %arg6: memref<1x256xf32, #tpu.memory_space<vmem>>, %arg7: memref<256x128xbf16, #tpu.memory_space<vmem>>, %arg8: memref<1x128xf32, #tpu.memory_space<vmem>>, %arg9: memref<128x128xbf16, #tpu.memory_space<vmem>>, %arg10: memref<1x128xf32, #tpu.memory_space<vmem>>, %arg11: memref<2x128xf32, #tpu.memory_space<vmem>>) attributes {dimension_semantics = [#tpu.dimension_semantics<parallel>], iteration_bounds = array<i64: 1>, scalar_prefetch = 0 : i64, scratch_operands = 0 : i64, tpu.core_type = #tpu.core_type<tc>, window_params = [{transform_indices = @transform_0, window_bounds = array<i64: 2, 19, 32>}, {pipeline_mode = #tpu.pipeline_mode<synchronous>, transform_indices = @transform_1, window_bounds = array<i64: 128, 48>}, {pipeline_mode = #tpu.pipeline_mode<synchronous>, transform_indices = @transform_2, window_bounds = array<i64: 1, 48>}, {pipeline_mode = #tpu.pipeline_mode<synchronous>, transform_indices = @transform_3, window_bounds = array<i64: 16, 48>}, {pipeline_mode = #tpu.pipeline_mode<synchronous>, transform_indices = @transform_4, window_bounds = array<i64: 48, 256>}, {pipeline_mode = #tpu.pipeline_mode<synchronous>, transform_indices = @transform_5, window_bounds = array<i64: 1, 256>}, {pipeline_mode = #tpu.pipeline_mode<synchronous>, transform_indices = @transform_6, window_bounds = array<i64: 256, 128>}, {pipeline_mode = #tpu.pipeline_mode<synchronous>, transform_indices = @transform_7, window_bounds = array<i64: 1, 128>}, {pipeline_mode = #tpu.pipeline_mode<synchronous>, transform_indices = @transform_8, window_bounds = array<i64: 128, 128>}, {pipeline_mode = #tpu.pipeline_mode<synchronous>, transform_indices = @transform_9, window_bounds = array<i64: 1, 128>}, {transform_indices = @transform_10, window_bounds = array<i64: 2, 128>}]} {
    %c0 = arith.constant 0 : index
    %c0_0 = arith.constant 0 : index
    %c0_1 = arith.constant 0 : index
    %0 = vector.load %arg1[%c0, %c0_0, %c0_1] : memref<2x19x32xf32, #tpu.memory_space<vmem>>, vector<2x19x32xf32>
    %1 = vector.extract_strided_slice %0 {offsets = [0, 0, 0], sizes = [2, 16, 32], strides = [1, 1, 1]} : vector<2x19x32xf32> to vector<2x16x32xf32>
    %2 = vector.extract_strided_slice %0 {offsets = [0, 1, 0], sizes = [2, 16, 32], strides = [1, 1, 1]} : vector<2x19x32xf32> to vector<2x16x32xf32>
    %3 = vector.extract_strided_slice %0 {offsets = [0, 2, 0], sizes = [2, 16, 32], strides = [1, 1, 1]} : vector<2x19x32xf32> to vector<2x16x32xf32>
    %4 = vector.extract_strided_slice %0 {offsets = [0, 3, 0], sizes = [2, 16, 32], strides = [1, 1, 1]} : vector<2x19x32xf32> to vector<2x16x32xf32>
    %5 = tpu.concatenate %1, %2, %3, %4 in 2 : vector<2x16x32xf32>, vector<2x16x32xf32>, vector<2x16x32xf32>, vector<2x16x32xf32> -> vector<2x16x128xf32>
    %6 = vector.shape_cast %5 : vector<2x16x128xf32> to vector<32x128xf32>
    %7 = arith.truncf %6 : vector<32x128xf32> to vector<32x128xbf16>
    %c0_2 = arith.constant 0 : index
    %c0_3 = arith.constant 0 : index
    %8 = vector.load %arg2[%c0_2, %c0_3] : memref<128x48xbf16, #tpu.memory_space<vmem>>, vector<128x48xbf16>
    %cst = arith.constant dense<0.000000e+00> : vector<32x48xf32>
    %9 = tpu.matmul %7, %8, %cst {dimension_numbers = #tpu.dot_dimension_numbers<[1], [0], [0], [1], [0, 0, 1, 1], [], []>} : vector<32x128xbf16>, vector<128x48xbf16>, vector<32x48xf32> -> vector<32x48xf32>
    %c0_4 = arith.constant 0 : index
    %c0_5 = arith.constant 0 : index
    %10 = vector.load %arg3[%c0_4, %c0_5] : memref<1x48xf32, #tpu.memory_space<vmem>>, vector<1x48xf32>
    %11 = vector.broadcast %10 : vector<1x48xf32> to vector<32x48xf32>
    %12 = arith.addf %9, %11 : vector<32x48xf32>
    %cst_6 = arith.constant 0.000000e+00 : f32
    %13 = vector.broadcast %cst_6 : f32 to vector<32x48xf32>
    %14 = arith.maximumf %12, %13 : vector<32x48xf32>
    %15 = vector.shape_cast %14 : vector<32x48xf32> to vector<2x16x48xf32>
    %c0_7 = arith.constant 0 : index
    %c0_8 = arith.constant 0 : index
    %16 = vector.load %arg4[%c0_7, %c0_8] : memref<16x48xf32, #tpu.memory_space<vmem>>, vector<16x48xf32>
    %17 = vector.shape_cast %16 : vector<16x48xf32> to vector<1x16x48xf32>
    %18 = vector.broadcast %17 : vector<1x16x48xf32> to vector<2x16x48xf32>
    %19 = arith.mulf %15, %18 : vector<2x16x48xf32>
    %cst_9 = arith.constant dense<0xFF800000> : vector<2x48xf32>
    %20 = vector.multi_reduction <maximumf>, %19, %cst_9 [1] : vector<2x16x48xf32> to vector<2x48xf32>
    %21 = arith.truncf %20 : vector<2x48xf32> to vector<2x48xbf16>
    %c0_10 = arith.constant 0 : index
    %c0_11 = arith.constant 0 : index
    %22 = vector.load %arg5[%c0_10, %c0_11] : memref<48x256xbf16, #tpu.memory_space<vmem>>, vector<48x256xbf16>
    %cst_12 = arith.constant dense<0.000000e+00> : vector<2x256xf32>
    %23 = tpu.matmul %21, %22, %cst_12 {dimension_numbers = #tpu.dot_dimension_numbers<[1], [0], [0], [1], [0, 0, 1, 1], [], []>} : vector<2x48xbf16>, vector<48x256xbf16>, vector<2x256xf32> -> vector<2x256xf32>
    %c0_13 = arith.constant 0 : index
    %c0_14 = arith.constant 0 : index
    %24 = vector.load %arg6[%c0_13, %c0_14] : memref<1x256xf32, #tpu.memory_space<vmem>>, vector<1x256xf32>
    %25 = vector.broadcast %24 : vector<1x256xf32> to vector<2x256xf32>
    %26 = arith.addf %23, %25 : vector<2x256xf32>
    %cst_15 = arith.constant 0.000000e+00 : f32
    %27 = vector.broadcast %cst_15 : f32 to vector<2x256xf32>
    %28 = arith.maximumf %26, %27 : vector<2x256xf32>
    %29 = arith.truncf %28 : vector<2x256xf32> to vector<2x256xbf16>
    %c0_16 = arith.constant 0 : index
    %c0_17 = arith.constant 0 : index
    %30 = vector.load %arg7[%c0_16, %c0_17] : memref<256x128xbf16, #tpu.memory_space<vmem>>, vector<256x128xbf16>
    %cst_18 = arith.constant dense<0.000000e+00> : vector<2x128xf32>
    %31 = tpu.matmul %29, %30, %cst_18 {dimension_numbers = #tpu.dot_dimension_numbers<[1], [0], [0], [1], [0, 0, 1, 1], [], []>} : vector<2x256xbf16>, vector<256x128xbf16>, vector<2x128xf32> -> vector<2x128xf32>
    %c0_19 = arith.constant 0 : index
    %c0_20 = arith.constant 0 : index
    %32 = vector.load %arg8[%c0_19, %c0_20] : memref<1x128xf32, #tpu.memory_space<vmem>>, vector<1x128xf32>
    %33 = vector.broadcast %32 : vector<1x128xf32> to vector<2x128xf32>
    %34 = arith.addf %31, %33 : vector<2x128xf32>
    %cst_21 = arith.constant 0.000000e+00 : f32
    %35 = vector.broadcast %cst_21 : f32 to vector<2x128xf32>
    %36 = arith.maximumf %34, %35 : vector<2x128xf32>
    %37 = arith.truncf %36 : vector<2x128xf32> to vector<2x128xbf16>
    %c0_22 = arith.constant 0 : index
    %c0_23 = arith.constant 0 : index
    %38 = vector.load %arg9[%c0_22, %c0_23] : memref<128x128xbf16, #tpu.memory_space<vmem>>, vector<128x128xbf16>
    %cst_24 = arith.constant dense<0.000000e+00> : vector<2x128xf32>
    %39 = tpu.matmul %37, %38, %cst_24 {dimension_numbers = #tpu.dot_dimension_numbers<[1], [0], [0], [1], [0, 0, 1, 1], [], []>} : vector<2x128xbf16>, vector<128x128xbf16>, vector<2x128xf32> -> vector<2x128xf32>
    %c0_25 = arith.constant 0 : index
    %c0_26 = arith.constant 0 : index
    %40 = vector.load %arg10[%c0_25, %c0_26] : memref<1x128xf32, #tpu.memory_space<vmem>>, vector<1x128xf32>
    %41 = vector.broadcast %40 : vector<1x128xf32> to vector<2x128xf32>
    %42 = arith.addf %39, %41 : vector<2x128xf32>
    %c0_27 = arith.constant 0 : index
    %c0_28 = arith.constant 0 : index
    %43 = vector.load %arg11[%c0_27, %c0_28] : memref<2x128xf32, #tpu.memory_space<vmem>>, vector<2x128xf32>
    tpu.vector_store %arg11[%c0_27, %c0_28], %42 {strides = array<i32>} : memref<2x128xf32, #tpu.memory_space<vmem>>, vector<2x128xf32>,
    return
  }
  func.func @transform_0(%arg0: i32) -> (i32, i32, i32) {
    %c0_i32 = arith.constant 0 : i32
    %c0_i32_0 = arith.constant 0 : i32
    %c0_i32_1 = arith.constant 0 : i32
    return %arg0, %c0_i32, %c0_i32_0 : i32, i32, i32
  }
  func.func @transform_1(%arg0: i32) -> (i32, i32) {
    %c0_i32 = arith.constant 0 : i32
    %c0_i32_0 = arith.constant 0 : i32
    %c0_i32_1 = arith.constant 0 : i32
    return %c0_i32, %c0_i32_0 : i32, i32
  }
  func.func @transform_2(%arg0: i32) -> (i32, i32) {
    %c0_i32 = arith.constant 0 : i32
    %c0_i32_0 = arith.constant 0 : i32
    %c0_i32_1 = arith.constant 0 : i32
    return %c0_i32, %c0_i32_0 : i32, i32
  }
  func.func @transform_3(%arg0: i32) -> (i32, i32) {
    %c0_i32 = arith.constant 0 : i32
    %c0_i32_0 = arith.constant 0 : i32
    %c0_i32_1 = arith.constant 0 : i32
    return %c0_i32, %c0_i32_0 : i32, i32
  }
  func.func @transform_4(%arg0: i32) -> (i32, i32) {
    %c0_i32 = arith.constant 0 : i32
    %c0_i32_0 = arith.constant 0 : i32
    %c0_i32_1 = arith.constant 0 : i32
    return %c0_i32, %c0_i32_0 : i32, i32
  }
  func.func @transform_5(%arg0: i32) -> (i32, i32) {
    %c0_i32 = arith.constant 0 : i32
    %c0_i32_0 = arith.constant 0 : i32
    %c0_i32_1 = arith.constant 0 : i32
    return %c0_i32, %c0_i32_0 : i32, i32
  }
  func.func @transform_6(%arg0: i32) -> (i32, i32) {
    %c0_i32 = arith.constant 0 : i32
    %c0_i32_0 = arith.constant 0 : i32
    %c0_i32_1 = arith.constant 0 : i32
    return %c0_i32, %c0_i32_0 : i32, i32
  }
  func.func @transform_7(%arg0: i32) -> (i32, i32) {
    %c0_i32 = arith.constant 0 : i32
    %c0_i32_0 = arith.constant 0 : i32
    %c0_i32_1 = arith.constant 0 : i32
    return %c0_i32, %c0_i32_0 : i32, i32
  }
  func.func @transform_8(%arg0: i32) -> (i32, i32) {
    %c0_i32 = arith.constant 0 : i32
    %c0_i32_0 = arith.constant 0 : i32
    %c0_i32_1 = arith.constant 0 : i32
    return %c0_i32, %c0_i32_0 : i32, i32
  }
  func.func @transform_9(%arg0: i32) -> (i32, i32) {
    %c0_i32 = arith.constant 0 : i32
    %c0_i32_0 = arith.constant 0 : i32
    %c0_i32_1 = arith.constant 0 : i32
    return %c0_i32, %c0_i32_0 : i32, i32
  }
  func.func @transform_10(%arg0: i32) -> (i32, i32) {
    %c0_i32 = arith.constant 0 : i32
    %c0_i32_0 = arith.constant 0 : i32
    return %arg0, %c0_i32 : i32, i32
  }
}

</mosaic_0001>

<bundles_post_ra>
// kernel: tpu_custom_call.1
= control target key start
LH: loop header
LB: loop body
LE: loop exit
PB: predicated region body
PF: predicated region fallthrough
CT: control target
= control target key end

     0   :  { %15 = vsyncpa [#allocation3], 0  ;;  %s1178_s0 = inlined_call_operand.vmem [shape: f32[2,19,32], index: 0, kind: input, shape index: {}]   ;;  %s1179_s1 = inlined_call_operand.vmem [shape: bf16[128,48], index: 1, kind: input, shape index: {}]   ;;  %s1180_s2 = inlined_call_operand.vmem [shape: f32[1,48], index: 2, kind: input, shape index: {}]   ;;  %s1181_s3 = inlined_call_operand.vmem [shape: f32[16,48], index: 3, kind: input, shape index: {}]   ;;  %s1182_s4 = inlined_call_operand.hbm [shape: bf16[48,256], index: 4, kind: input, shape index: {}]   ;;  %s1183_s5 = inlined_call_operand.vmem [shape: f32[1,256], index: 5, kind: input, shape index: {}]   ;;  %s1184_s6 = inlined_call_operand.vmem [shape: bf16[256,128], index: 6, kind: input, shape index: {}]   ;;  %s1185_s7 = inlined_call_operand.vmem [shape: f32[1,128], index: 7, kind: input, shape index: {}]   ;;  %s1186_s8 = inlined_call_operand.hbm [shape: bf16[128,128], index: 8, kind: input, shape index: {}]   ;;  %s1187_s9 = inlined_call_operand.vmem [shape: f32[1,128], index: 9, kind: input, shape index: {}]   ;;  %s1188_s10 = inlined_call_operand.hbm [shape: f32[2,128], index: 10, kind: output, shape index: {}]  }
   0x1   :  { %16 = vsyncpa [#allocation6], 0 }
   0x2   :  { %17 = vsyncpa [#allocation4], 0  ;;  %s30_s15 = sshll.u32 %s1182_s4, 4  ;;  %s939_s16 = smov [#allocation2]   ;;  %s31_s15 = int_to_ptr.hbm [resolvable:$true] %s30_s15 }
   0x3   :  { %s32_s17 = sshll.u32 %s939_s16, 4  ;;  %s49_s20 = sshll.u32 %s1186_s8, 4  ;;  %s33_s17 = int_to_ptr.vmem [resolvable:$true] %s32_s17  ;;  %s50_s20 = int_to_ptr.hbm [resolvable:$true] %s49_s20 }
   0x4   :  { %s940_s21 = smov 128   ;;  %s941_s22 = smov 8  }
   0x5   :  { %38 = dma.hbm_to_vmem [thread:$0]  %s31_s15, 768, %s33_s17, [#allocation3], %s940_s21, %s940_s21, %s941_s22  }
   0x6   :  { %s942_s23 = smov [#allocation5]   ;;  %s943_s25 = smov 64  }
   0x7   :  { %s51_s24 = sshll.u32 %s942_s23, 4  ;;  %s944_s26 = smov 4   ;;  %s52_s24 = int_to_ptr.vmem [resolvable:$true] %s51_s24 }
   0x8   :  { %57 = dma.hbm_to_vmem [thread:$0]  %s50_s20, 1024, %s52_s24, [#allocation6], %s943_s25, %s943_s25, %s944_s26  }
   0x9   :  { %933 = dma.done.wait [#allocation3], 768  }
   0xa   :  { %934 = vsyncadd [#allocation3], 4294966528 }
   0xb   :  { %935 = dma.done.wait [#allocation6], 1024  }
   0xc   :  { %936 = vsyncadd [#allocation6], 4294966272  ;;  %vm81_vm0 = vcmask 1046528   ;;  %v1014_v0 = vld [vmem:[%s1178_s0] sm:$0xff]  ;;  %v1019_v1 = vld [vmem:[%s1178_s0 + $0x8] sm:$0xff]  ;;  %vm127_vm1 = vcmask 1044480  }
   0xd   :  { %v71_v2 = vld [vmem:[%s1178_s0 + $0x10] sm:$0x7]  ;;  %vm104_vm2 = vcmask 1045504   ;;  %v82_v3 = vrot.slane %v1014_v0, 1  ;;  %v83_v4 = vrot.slane %v1019_v1, 1  ;;  %v128_v6 = vrot.slane %v1014_v0, 3 }
   0xe   :  { %v85_v5 = vrot.slane %v71_v2, 1  ;;  %v1030_v7 = vld [vmem:[%s1178_s0 + $0x18] sm:$0xff]  ;;  %v1035_v8 = vld [vmem:[%s1178_s0 + $0x20] sm:$0xff]  ;;  %v129_v9 = vrot.slane %v1019_v1, 3  ;;  %v131_v10 = vrot.slane %v71_v2, 3  ;;  %v105_v11 = vrot.slane %v1014_v0, 2 }
   0xf   :  { %v106_v12 = vrot.slane %v1019_v1, 2  ;;  %v74_v13 = vld [vmem:[%s1178_s0 + $0x28] sm:$0x7]  ;;  %v84_v14 = vsel %vm81_vm0, %v82_v3, %v83_v4  ;;  %v108_v16 = vrot.slane %v71_v2, 2  ;;  %v87_v17 = vrot.slane %v1030_v7, 1  ;;  %v788_v18 = vld [vmem:[%s1179_s1 + $0x38] sm:$0xff] }
  0x10   :  { %v86_v15 = vsel %vm81_vm0, %v83_v4, %v85_v5  ;;  %v130_v20 = vsel %vm127_vm1, %v128_v6, %v129_v9  ;;  %v132_v21 = vsel %vm127_vm1, %v129_v9, %v131_v10  ;;  %v787_v22 = vld [vmem:[%s1179_s1 + $0x30] sm:$0xff]  ;;  %v88_v24 = vrot.slane %v1035_v8, 1  ;;  %235 = vmatpush.bf16.msra.mxu0 %v788_v18  ;;  %s945_s0 = smov 32   ;;  %s946_s21 = smov 96   ;;  %v786_v39 = vld [vmem:[%s1179_s1 + $0x28] sm:$0xff]  ;;  %v785_v44 = vld [vmem:[%s1179_s1 + $0x20] sm:$0xff] }
  0x11   :  { %v828_v19 = vpack.i.bf16 %v86_v15, %v84_v14  ;;  %v838_v23 = vpack.i.bf16 %v132_v21, %v130_v20  ;;  %v90_v25 = vrot.slane %v74_v13, 1  ;;  %v107_v26 = vsel %vm104_vm2, %v105_v11, %v106_v12  ;;  %v784_v46 = vld [vmem:[%s1179_s1 + $0x18] sm:$0xff]  ;;  %v783_v47 = vld [vmem:[%s1179_s1 + $0x10] sm:$0xff]  ;;  %v782_v48 = vld [vmem:[%s1179_s1 + $0x8] sm:$0xff]  ;;  %s947_s24 = smov [#allocation7]   ;;  %s616_s8 = sshll.u32 %s1188_s10, 4  ;;  %s617_s8 = int_to_ptr.hbm [resolvable:$true] %s616_s8 }
  0x12   :  { %v110_v27 = vrot.slane %v1030_v7, 2  ;;  %v111_v28 = vrot.slane %v1035_v8, 2  ;;  %v113_v29 = vrot.slane %v74_v13, 2  ;;  %v109_v30 = vsel %vm104_vm2, %v106_v12, %v108_v16  ;;  %v781_v49 = vld [vmem:[%s1179_s1] sm:$0xff]  ;;  %s614_s26 = sshll.u32 %s947_s24, 4  ;;  %s615_s26 = int_to_ptr.vmem [resolvable:$true] %s614_s26 }
  0x13   :  { %829 = vrot.lane.b32.xlu0 %v828_v19, %s945_s0  ;;  %839 = vrot.lane.b32.xlu1 %v838_v23, %s946_s21  ;;  %v89_v31 = vsel %vm81_vm0, %v87_v17, %v88_v24  ;;  %v91_v32 = vsel %vm81_vm0, %v88_v24, %v90_v25  ;;  %v133_v33 = vrot.slane %v1030_v7, 3  ;;  %v134_v36 = vrot.slane %v1035_v8, 3  ;;  %v858_v20 = vld [vmem:[%s1180_s2] ss:$0 sm:$0xff]  ;;  %v794_v24 = vld [vmem:[#allocation2 + $0x24] sm:$0xf0] }
  0x14   :  { %v112_v34 = vsel %vm104_vm2, %v110_v27, %v111_v28  ;;  %v114_v35 = vsel %vm104_vm2, %v111_v28, %v113_v29  ;;  %v136_v37 = vrot.slane %v74_v13, 3  ;;  %236 = vmatpush.bf16.msra.mxu0 %v787_v22  ;;  %v833_v40 = vpack.i.bf16 %v109_v30, %v107_v26  ;;  %v677_v23 = vld [vmem:[#allocation2 + $0x20] sm:$0xf]  ;;  %v793_v27 = vld [vmem:[#allocation2 + $0x24] sm:$0xf] }
  0x15   :  { %v848_v38 = vpack.i.bf16 %v114_v35, %v112_v34  ;;  %v843_v41 = vpack.i.bf16 %v91_v32, %v89_v31  ;;  %v135_v42 = vsel %vm127_vm1, %v133_v33, %v134_v36  ;;  %vm150_vm3 = vcmask 261120   ;;  %v679_v28 = vld [vmem:[#allocation2 + $0x28] sm:$0xf0]  ;;  %v669_v29 = vld [vmem:[#allocation2 + $0x10] sm:$0xf] }
  0x16   :  { %v137_v43 = vsel %vm127_vm1, %v134_v36, %v136_v37  ;;  %vm155_vm4 = vcmask 523264   ;;  %vm160_vm5 = vcmask 785408   ;;  %v678_v26 = vor.u32 %v794_v24, %v677_v23  ;;  %v792_v32 = vld [vmem:[#allocation2 + $0x14] sm:$0xf0]  ;;  %v791_v33 = vld [vmem:[#allocation2 + $0x14] sm:$0xf] }
  0x17   :  { %849 = vrot.lane.b32.xlu2 %v848_v38, %s943_s25  ;;  %v853_v45 = vpack.i.bf16 %v137_v43, %v135_v42  ;;  %v682_v31 = vor.u32 %v793_v27, %v679_v28  ;;  %v671_v34 = vld [vmem:[#allocation2 + $0x18] sm:$0xf0]  ;;  %v259_v35 = vld [vmem:[%s1181_s3 + $0x8] sm:$0xff]  ;;  %v670_v36 = vor.u32 %v792_v32, %v669_v29  ;;  %vm264_vm6 = vcmask 392192   ;;  %v789_v42 = vld [vmem:[#allocation2 + $0x4] sm:$0xf] }
  0x18   :  { %237 = vmatpush.bf16.msra.mxu0 %v786_v39  ;;  %342 = vmatpush.bf16.msra.mxu1 %v678_v26  ;;  %v674_v39 = vor.u32 %v791_v33, %v671_v34  ;;  %v663_v43 = vld [vmem:[#allocation2 + $0x8] sm:$0xf0]  ;;  %vm301_vm7 = vcmask 1041409   ;;  %v805_v27 = vld [vmem:[%s1184_s6 + $0x50] sm:$0xff]  ;;  %v795_v28 = vld [vmem:[%s1184_s6] sm:$0xff] }
  0x19   :  { %355 = vmatpush.bf16.msra.mxu2 %v682_v31  ;;  %v796_v26 = vld [vmem:[%s1184_s6 + $0x8] sm:$0xff]  ;;  %v817_v32 = vld [vmem:[#allocation5 + $0x30] sm:$0xff]  ;;  %v816_v33 = vld [vmem:[#allocation5 + $0x28] sm:$0xff] }
  0x1a   :  { %v804_v29 = vld [vmem:[%s1184_s6 + $0x48] sm:$0xff]  ;;  %v815_v34 = vld [vmem:[#allocation5 + $0x20] sm:$0xff] }
  0x1b   :  { %834 = vrot.lane.b32.xlu0 %v833_v40, %s943_s25  ;;  %844 = vrot.lane.b32.xlu1 %v843_v41, %s945_s0  ;;  %v661_v40 = vld [vmem:[#allocation2] sm:$0xf]  ;;  %v790_v41 = vld [vmem:[#allocation2 + $0x4] sm:$0xf0] }
  0x1c   :  { %238 = vmatpush.bf16.msra.mxu0 %v785_v44  ;;  %343 = vmatpush.bf16.msra.mxu1 %v670_v36  ;;  %v818_v31 = vld [vmem:[#allocation5 + $0x38] sm:$0xff] }
  0x1d   :  { %356 = vmatpush.bf16.msra.mxu2 %v674_v39  ;;  %v814_v36 = vld [vmem:[#allocation5 + $0x18] sm:$0xff]  ;;  %v813_v39 = vld [vmem:[#allocation5 + $0x10] sm:$0xff] }
  0x1f   :  { %854 = vrot.lane.b32.xlu2 %v853_v45, %s946_s21  ;;  %v662_v45 = vor.u32 %v790_v41, %v661_v40 }
  0x20   :  { %239 = vmatpush.bf16.msra.mxu0 %v784_v46 }
  0x21   :  { %344 = vmatpush.bf16.msra.mxu1 %v662_v45 }
  0x24   :  { %240 = vmatpush.bf16.msra.mxu0 %v783_v47 }
  0x28   :  { %241 = vmatpush.bf16.msra.mxu0 %v782_v48  ;;  %v666_v48 = vor.u32 %v789_v42, %v663_v43 }
  0x2a   :  { %357 = vmatpush.bf16.msra.mxu2 %v666_v48 }
  0x2c   :  { %242 = vmatpush.bf16.msra.mxu0 %v781_v49 }
  0x2e   :  { %595 = vmatpush.bf16.msrb.mxu2 %v818_v31 }
  0x32   :  { %596 = vmatpush.bf16.msrb.mxu2 %v817_v32 }
  0x36   :  { %597 = vmatpush.bf16.msrb.mxu2 %v816_v33 }
  0x3a   :  { %598 = vmatpush.bf16.msrb.mxu2 %v815_v34 }
  0x3e   :  { %599 = vmatpush.bf16.msrb.mxu2 %v814_v36 }
  0x42   :  { %600 = vmatpush.bf16.msrb.mxu2 %v813_v39 }
  0x71   :  { %v850_v59 = vpop.permute.xlu2 %849 }
  0x72   :  { %v852_v10 = vunpack.i.h.bf16 %v850_v59  ;;  %v851_v11 = vunpack.i.l.bf16 %v850_v59 }
  0x79   :  { %v855_v12 = vpop.permute.xlu2 %854 }
  0x7a   :  { %v857_v13 = vunpack.i.h.bf16 %v855_v12  ;;  %v856_v14 = vunpack.i.l.bf16 %v855_v12 }
  0x85   :  { %v830_v50 = vpop.permute.xlu0 %829  ;;  %v840_v51 = vpop.permute.xlu1 %839 }
  0x86   :  { %v832_v52 = vunpack.i.h.bf16 %v830_v50  ;;  %v831_v53 = vunpack.i.l.bf16 %v830_v50  ;;  %v842_v54 = vunpack.i.h.bf16 %v840_v51  ;;  %v841_v55 = vunpack.i.l.bf16 %v840_v51 }
  0x88   :  { %v152_v60 = vsel %vm150_vm3, %v1019_v1, %v832_v52  ;;  %v151_v61 = vsel %vm150_vm3, %v1014_v0, %v831_v53  ;;  %v802_v53 = vld [vmem:[%s1184_s6 + $0x38] sm:$0xff] }
  0x89   :  { %499 = vmatpush.bf16.msra.mxu3 %v802_v53 }
  0x8d   :  { %v835_v56 = vpop.permute.xlu0 %834  ;;  %v845_v5 = vpop.permute.xlu1 %844 }
  0x8e   :  { %v837_v57 = vunpack.i.h.bf16 %v835_v56  ;;  %v836_v58 = vunpack.i.l.bf16 %v835_v56  ;;  %v847_v6 = vunpack.i.h.bf16 %v845_v5  ;;  %v846_v9 = vunpack.i.l.bf16 %v845_v5  ;;  %v801_v56 = vld [vmem:[%s1184_s6 + $0x30] sm:$0xff] }
  0x8f   :  { %500 = vmatpush.bf16.msra.mxu3 %v801_v56 }
  0x90   :  { %v156_v62 = vsel %vm155_vm4, %v151_v61, %v836_v58  ;;  %v157_v63 = vsel %vm155_vm4, %v152_v60, %v837_v57  ;;  %v154_v1 = vsel %vm150_vm3, %v1035_v8, %v847_v6  ;;  %v153_v0 = vsel %vm150_vm3, %v1030_v7, %v846_v9  ;;  %v258_v7 = vld [vmem:[%s1181_s3] sm:$0xff]  ;;  %v809_v57 = vld [vmem:[%s1184_s6 + $0x70] sm:$0xff] }
  0x91   :  { %v161_v2 = vsel %vm160_vm5, %v156_v62, %v841_v55  ;;  %v162_v3 = vsel %vm160_vm5, %v157_v63, %v842_v54  ;;  %v158_v15 = vsel %vm155_vm4, %v153_v0, %v851_v11  ;;  %v159_v16 = vsel %vm155_vm4, %v154_v1, %v852_v10  ;;  %v810_v54 = vld [vmem:[%s1184_s6 + $0x78] sm:$0xff]  ;;  %v800_v63 = vld [vmem:[%s1184_s6 + $0x28] sm:$0xff]  ;;  %v799_v9 = vld [vmem:[%s1184_s6 + $0x20] sm:$0xff] }
  0x92   :  { %v165_v4 = vpack.c.bf16 %v162_v3, %v161_v2  ;;  %v163_v17 = vsel %vm160_vm5, %v158_v15, %v856_v14  ;;  %v164_v18 = vsel %vm160_vm5, %v159_v16, %v857_v13  ;;  %512 = vmatpush.bf16.msrb.mxu1 %v810_v54  ;;  %v808_v2 = vld [vmem:[%s1184_s6 + $0x68] sm:$0xff]  ;;  %v807_v10 = vld [vmem:[%s1184_s6 + $0x60] sm:$0xff]  ;;  %v798_v0 = vld [vmem:[%s1184_s6 + $0x18] sm:$0xff] }
  0x93   :  { %v166_v19 = vpack.c.bf16 %v164_v18, %v163_v17  ;;  %501 = vmatpush.bf16.msra.mxu3 %v800_v63  ;;  %v806_v13 = vld [vmem:[%s1184_s6 + $0x58] sm:$0xff]  ;;  %v797_v17 = vld [vmem:[%s1184_s6 + $0x10] sm:$0xff] }
  0x94   :  { %243 = vmatmul.bf16.vlgmr.msra.gmra.mxu0 %v165_v4 }
  0x96   :  { %513 = vmatpush.bf16.msrb.mxu1 %v809_v57 }
  0x97   :  { %502 = vmatpush.bf16.msra.mxu3 %v799_v9 }
  0x9a   :  { %514 = vmatpush.bf16.msrb.mxu1 %v808_v2 }
  0x9b   :  { %503 = vmatpush.bf16.msra.mxu3 %v798_v0 }
  0x9e   :  { %515 = vmatpush.bf16.msrb.mxu1 %v807_v10 }
  0x9f   :  { %504 = vmatpush.bf16.msra.mxu3 %v797_v17 }
  0xa2   :  { %516 = vmatpush.bf16.msrb.mxu1 %v806_v13 }
  0xa3   :  { %505 = vmatpush.bf16.msra.mxu3 %v796_v26 }
  0xa4   :  { %248 = vmatmul.bf16.gmra.mxu0 %v166_v19 }
  0xa6   :  { %517 = vmatpush.bf16.msrb.mxu1 %v805_v27 }
  0xa7   :  { %506 = vmatpush.bf16.msra.mxu3 %v795_v28 }
  0xaa   :  { %518 = vmatpush.bf16.msrb.mxu1 %v804_v29 }
 0x111   :  { %v244_v8 = vpop.f32.mrf.mxu0 }
 0x112   :  { %v245_v21 = vadd.f32 %v858_v20, %v244_v8 }
 0x114   :  { %v254_v22 = vmax.f32 %v245_v21, 0.0 }
 0x116   :  { %v260_v37 = vmul.f32 %v258_v7, %v254_v22 }
 0x118   :  { %v265_v46 = vsel %vm264_vm6, %v260_v37, -inf }
 0x119   :  { %v246_v25 = vpop.f32.mrf.mxu0 }
 0x11a   :  { %v247_v30 = vadd.f32 %v858_v20, %v246_v25 }
 0x11c   :  { %v255_v38 = vmax.f32 %v247_v30, 0.0  ;;  %v803_v30 = vld [vmem:[%s1184_s6 + $0x40] sm:$0xff] }
 0x11d   :  { %519 = vmatpush.bf16.msrb.mxu1 %v803_v30 }
 0x11e   :  { %v261_v44 = vmul.f32 %v259_v35, %v255_v38 }
 0x120   :  { %v266_v47 = vsel %vm264_vm6, %v261_v44, -inf }
 0x121   :  { %v267_v49 = vmax.f32 %v265_v46, %v266_v47  ;;  %v249_v50 = vpop.f32.mrf.mxu0 }
 0x122   :  { %v250_v51 = vadd.f32 %v858_v20, %v249_v50  ;;  %v812_v50 = vld [vmem:[#allocation5 + $0x8] sm:$0xff] }
 0x123   :  { %v268_v52 = vrot.slane %v267_v49, 4  ;;  %601 = vmatpush.bf16.msrb.mxu2 %v812_v50 }
 0x124   :  { %v256_v55 = vmax.f32 %v250_v51, 0.0  ;;  %v811_v51 = vld [vmem:[#allocation5] sm:$0xff] }
 0x125   :  { %v269_v58 = vmax.f32 %v267_v49, %v268_v52  ;;  %v859_v52 = vld [vmem:[%s1185_s7] ss:$0 sm:$0xff] }
 0x126   :  { %v262_v61 = vmul.f32 %v258_v7, %v256_v55 }
 0x127   :  { %v270_v3 = vrot.slane %v269_v58, 2  ;;  %602 = vmatpush.bf16.msrb.mxu2 %v811_v51 }
 0x128   :  { %v274_v5 = vsel %vm264_vm6, %v262_v61, -inf  ;;  %v860_v61 = vld [vmem:[%s1187_s9] ss:$0 sm:$0xff] }
 0x129   :  { %v251_v59 = vpop.f32.mrf.mxu0  ;;  %v271_v11 = vmax.f32 %v269_v58, %v270_v3 }
 0x12a   :  { %v252_v60 = vadd.f32 %v858_v20, %v251_v59 }
 0x12b   :  { %v272_v15 = vrot.slane %v271_v11, 1 }
 0x12c   :  { %v257_v62 = vmax.f32 %v252_v60, 0.0 }
 0x12d   :  { %v273_v19 = vmax.f32 %v271_v11, %v272_v15 }
 0x12e   :  { %v263_v4 = vmul.f32 %v259_v35, %v257_v62  ;;  %v291_v35 = vld [vmem:[%s1183_s5] sm:$0x3] }
 0x12f   :  { %v283_v21 = vpack.c.bf16 %v273_v19, %v273_v19  ;;  %v293_v37 = vperm.slane %v291_v35, 0  ;;  %v294_v42 = vperm.slane %v291_v35, 1 }
 0x130   :  { %v275_v6 = vsel %vm264_vm6, %v263_v4, -inf }
 0x131   :  { %v276_v12 = vmax.f32 %v274_v5, %v275_v6  ;;  %v299_v7 = vunpack.c.l.b16 %v283_v21 }
 0x133   :  { %v277_v1 = vrot.slane %v276_v12, 4 }
 0x135   :  { %v278_v14 = vmax.f32 %v276_v12, %v277_v1 }
 0x137   :  { %v279_v16 = vrot.slane %v278_v14, 2 }
 0x139   :  { %v280_v18 = vmax.f32 %v278_v14, %v279_v16 }
 0x13b   :  { %v281_v20 = vrot.slane %v280_v18, 1 }
 0x13d   :  { %v282_v8 = vmax.f32 %v280_v18, %v281_v20 }
 0x13f   :  { %v284_v22 = vpack.c.bf16 %v282_v8, %v282_v8 }
 0x141   :  { %v300_v23 = vunpack.c.l.b16 %v284_v22 }
 0x143   :  { %v302_v24 = vsel %vm301_vm7, %v300_v23, %v299_v7 }
 0x144   :  { %v303_v25 = vpack.c.b16 %v302_v24, %v302_v24 }
 0x146   :  { %683 = vmatmul.msk.bf16.vlgmr.msra.gmra.mxu1 %vm264_vm6, %v303_v25  ;;  %684 = vmatmul.msk.bf16.vlgmr.msra.gmra.mxu2 %vm264_vm6, %v303_v25 }
 0x1c3   :  { %v346_v38 = vpop.f32.mrf.mxu1 }
 0x1c4   :  { %v347_v40 = vadd.f32 %v346_v38, %v293_v37 }
 0x1c6   :  { %v363_v41 = vmax.f32 %v347_v40, 0.0 }
 0x1c8   :  { %v365_v43 = vpack.c.bf16 %v363_v41, %v363_v41 }
 0x1c9   :  { %v359_v44 = vpop.f32.mrf.mxu2 }
 0x1ca   :  { %v360_v45 = vadd.f32 %v359_v44, %v294_v42  ;;  %507 = vmatmul.bf16.vlgmr.msra.gmra.mxu3 %v365_v43 }
 0x1cb   :  { %v348_v46 = vpop.f32.mrf.mxu1 }
 0x1cc   :  { %v364_v47 = vmax.f32 %v360_v45, 0.0 }
 0x1ce   :  { %v366_v48 = vpack.c.bf16 %v364_v47, %v364_v47 }
 0x1d0   :  { %520 = vmatmul.bf16.vlgmr.msrb.gmra.mxu1 %v366_v48 }
 0x1d1   :  { %v361_v49 = vpop.f32.mrf.mxu2 }
 0x24d   :  { %v508_v53 = vpop.f32.mrf.mxu3  ;;  %v521_v54 = vpop.f32.mrf.mxu1 }
 0x24e   :  { %v509_v55 = vadd.f32 %v859_v52, %v508_v53 }
 0x250   :  { %v522_v56 = vadd.f32 %v521_v54, %v509_v55 }
 0x252   :  { %v525_v57 = vmax.f32 %v522_v56, 0.0 }
 0x254   :  { %v526_v58 = vpack.c.bf16 %v525_v57, %v525_v57 }
 0x255   :  { %v510_v59 = vpop.f32.mrf.mxu3  ;;  %v523_v60 = vpop.f32.mrf.mxu1 }
 0x256   :  { %603 = vmatmul.bf16.vlgmr.msrb.gmra.mxu2 %v526_v58 }
 0x2d9   :  { %v604_v62 = vpop.f32.mrf.mxu2 }
 0x2da   :  { %v605_v63 = vadd.f32 %v860_v61, %v604_v62 }
 0x2dc   :  { %608 = vst [vmem:[#allocation7] sm:$0x3] %v605_v63 }
 0x2dd   :  { %619 = dma.vmem_to_hbm [thread:$0]  %s615_s26, 32, %s617_s8, [#allocation4]  }
 0x2e1   :  { %v606_v2 = vpop.f32.mrf.mxu2 }
 0x2e2   :  { %937 = dma.done.wait [#allocation4], 32  }
 0x2e3   :  { %938 = vsyncadd [#allocation4], 4294967264 }
 0x2e4   :  { %624 = vsyncpa [#allocation3], 1 }
 0x2e5   :  { %625 = vsyncpa [#allocation6], 1 }
 0x2e6   :  { %626 = vsyncpa [#allocation4], 1 }

</bundles_post_ra>
